<compile_context>
chip_gen: v7x
topology: tpu7x:2x2x1
jax: 0.10.0
libtpu: 0.0.40
codegen_flags: <defaults>
</compile_context>

<pallas_src>
import jax
import jax.numpy as jnp
from jax.experimental import pallas as pl
from jax.experimental.pallas import tpu as pltpu


def _num_tensorcores():
    """Per-chip TensorCore count: 2 on v4 megacore / v7x, else 1."""
    try:
        kind = jax.devices()[0].device_kind.lower()
    except Exception:
        return 1
    return 2 if ("v7" in kind or "v4" in kind) else 1


def _choose_tiling(R, D, itemsize, tile_bytes, n_split):
    """Pick (tm, td, sub, n_d, n_split, n_steps, num_blocks)."""
    align = max(8, 32 // max(1, itemsize))  # sublane packing: f32->8, bf16->16, i8->32

    # ---- lane (D) tiling: only when even an `align`-row tile blows the budget.
    td = D
    if D * align * itemsize > tile_bytes and D % 128 == 0:
        max_td = max(128, (tile_bytes // (align * itemsize)) // 128 * 128)
        for cand in range(int(max_td), 127, -128):
            if D % cand == 0:
                td = cand
                break
    n_d = D // td

    # ---- row (R) tiling: biggest aligned tile under the byte budget, no padding.
    rows_fit = max(align, tile_bytes // max(1, td * itemsize))
    tm = max(align, (rows_fit // align) * align)
    if R >= align:
        tm = min(tm, (R // align) * align)  # never exceed the array extent
        sub = 8
    else:
        tm = R                               # single full-dim block (always legal)
        sub = 8 if R % 8 == 0 else 1

    # ---- keep >=4 pipeline steps per core once the input is a few MiB
    #      (grid=(1,1,1) has zero DMA/compute overlap).
    total_bytes = R * D * itemsize
    if total_bytes > (4 << 20) and R >= align:
        want_steps = 4 * max(1, n_split)
        if pl.cdiv(R, tm) * n_d < want_steps:
            cap = max(align, (R // want_steps) // align * align)
            tm = min(tm, cap)

    num_blocks = pl.cdiv(R, tm)
    n_split = max(1, min(n_split, num_blocks))
    n_steps = pl.cdiv(num_blocks, n_split)
    return tm, td, sub, n_d, n_split, n_steps, num_blocks


def _make_kernel(use_weight, tm, td, sub, rows, n_steps, needs_mask):
    def kernel(*refs):
        if use_weight:
            pred_ref, gt_ref, w_ref, out_ref = refs
        else:
            pred_ref, gt_ref, out_ref = refs

        step = pl.program_id(2)  # row-step axis (reduction, innermost)

        @pl.when(step == 0)
        def _():
            out_ref[...] = jnp.zeros_like(out_ref)

        # d = (pred - gt) * w  (algebraically identical to pred*w - gt*w).
        d = pred_ref[...].astype(jnp.float32) - gt_ref[...].astype(jnp.float32)
        if use_weight:
            d = d * w_ref[...].astype(jnp.float32)  # (tm, 1) broadcast over td

        if needs_mask:
            # Zero rows beyond R (ragged last block / clamped duplicate slot).
            blk = pl.program_id(0) * n_steps + step
            row_ids = blk * tm + jax.lax.broadcasted_iota(jnp.int32, (tm, 1), 0)
            d = jnp.where(row_ids < rows, d, 0.0)

        ad = jnp.abs(d)
        huber = jnp.where(ad < 1.0, 0.5 * d * d, ad - 0.5)  # delta = 1.0

        if sub == 8:
            # Pure-VPU accumulation into an (8, td) sublane-aligned block;
            # the final 8->1 / cross-lane reduce is deferred to the wrapper.
            out_ref[...] += huber.reshape(tm // 8, 8, td).sum(axis=0)
        else:
            # Tiny-R fallback (R < 8): single block, one cheap reduce.
            out_ref[...] += jnp.sum(huber, axis=0, keepdims=True)

    return kernel


def joints_huber_loss(output, target, target_weight=None, use_target_weight=True,
                      tile_bytes=6 << 20, n_split=None):
    """output/target: (B, J, ...) heatmaps; target_weight: (B, J, 1)."""
    B, J = int(output.shape[0]), int(output.shape[1])
    D = 1
    for s in output.shape[2:]:
        D *= int(s)
    R = B * J

    # Contiguous, transpose-free reshape: (B, J, H, W) -> (B*J, D).
    pred = output.reshape(R, D)
    gt = target.reshape(R, D)
    itemsize = jnp.dtype(output.dtype).itemsize

    if n_split is None:
        n_split = _num_tensorcores()

    tm, td, sub, n_d, n_split, n_steps, num_blocks = _choose_tiling(
        R, D, itemsize, tile_bytes, n_split)

    needs_mask = (n_split * n_steps * tm != R)
    clamp = (n_split * n_steps > num_blocks)  # at most one fully-empty slot

    def row_blk(c, i):
        blk = c * n_steps + i
        return jnp.minimum(blk, num_blocks - 1) if clamp else blk

    in_specs = [
        pl.BlockSpec((tm, td), lambda c, jd, i: (row_blk(c, i), jd)),
        pl.BlockSpec((tm, td), lambda c, jd, i: (row_blk(c, i), jd)),
    ]
    args = [pred, gt]
    if use_target_weight:
        assert target_weight is not None
        w = target_weight.reshape(R, 1)
        in_specs.append(pl.BlockSpec((tm, 1), lambda c, jd, i: (row_blk(c, i), 0)))
        args.append(w)

    out_specs = pl.BlockSpec((sub, td), lambda c, jd, i: (c, jd))

    # 2 inputs x 2 buffers x tile + elementwise temps; capped so it is v7x-safe.
    tile_in = tm * td * itemsize
    vmem_limit = int(min(56 << 20, max(32 << 20, 6 * tile_in + (8 << 20))))

    partials = pl.pallas_call(
        _make_kernel(use_target_weight, tm, td, sub, R, n_steps, needs_mask),
        out_shape=jax.ShapeDtypeStruct((n_split * sub, D), jnp.float32),
        grid_spec=pltpu.PrefetchScalarGridSpec(
            num_scalar_prefetch=0,
            grid=(n_split, n_d, n_steps),
            in_specs=in_specs,
            out_specs=out_specs,
        ),
        compiler_params=pltpu.CompilerParams(
            dimension_semantics=("parallel", "parallel", "arbitrary"),
            vmem_limit_bytes=vmem_limit,
        ),
    )(*args)

    # Final cross-sublane / cross-lane / cross-core reduce + scaling (tiny; XLA).
    scale = 0.5 / (float(B) * float(D) * float(J))
    return jnp.sum(partials) * jnp.float32(scale)


def _reference(output, target, target_weight, use_target_weight):
    # Pure-JAX reference mirroring the PyTorch per-joint loop.
    B, J = output.shape[0], output.shape[1]
    pred = output.reshape(B, J, -1).astype(jnp.float32)
    gt = target.reshape(B, J, -1).astype(jnp.float32)
    loss = 0.0
    for idx in range(J):
        p, g = pred[:, idx, :], gt[:, idx, :]
        if use_target_weight:
            wj = target_weight[:, idx].astype(jnp.float32)  # (B, 1)
            p, g = p * wj, g * wj
        d = p - g
        ad = jnp.abs(d)
        h = jnp.where(ad < 1.0, 0.5 * d * d, ad - 0.5)
        loss = loss + 0.5 * jnp.mean(h)
    return loss / J


if __name__ == "__main__":
    key = jax.random.PRNGKey(0)
    k1, k2, k3 = jax.random.split(key, 3)

    # Small shapes consistent with the module: (B, J, H, W) heatmaps.
    B, J, H, W = 2, 4, 16, 16
    output = jax.random.normal(k1, (B, J, H, W), dtype=jnp.float32) * 2.0
    target = jax.random.normal(k2, (B, J, H, W), dtype=jnp.float32) * 2.0
    target_weight = jax.random.uniform(k3, (B, J, 1), dtype=jnp.float32)

    # Weighted path.
    loss = jax.block_until_ready(
        joints_huber_loss(output, target, target_weight, use_target_weight=True))
    ref = _reference(output, target, target_weight, True)
    assert jnp.allclose(loss, ref, rtol=1e-5, atol=1e-6), (loss, ref)

    # Unweighted path (kernel compiled without a weight operand).
    loss2 = jax.block_until_ready(
        joints_huber_loss(output, target, None, use_target_weight=False))
    ref2 = _reference(output, target, None, False)
    assert jnp.allclose(loss2, ref2, rtol=1e-5, atol=1e-6), (loss2, ref2)

    # Multi-step + ragged-tail mask path (R = 20 is not a multiple of the tile).
    k4, k5, k6 = jax.random.split(jax.random.PRNGKey(1), 3)
    B2, J2 = 4, 5
    out_b = jax.random.normal(k4, (B2, J2, H, W), dtype=jnp.float32) * 2.0
    tgt_b = jax.random.normal(k5, (B2, J2, H, W), dtype=jnp.float32) * 2.0
    w_b = jax.random.uniform(k6, (B2, J2, 1), dtype=jnp.float32)
    loss3 = jax.block_until_ready(
        joints_huber_loss(out_b, tgt_b, w_b, use_target_weight=True,
                          tile_bytes=16 * 1024))
    ref3 = _reference(out_b, tgt_b, w_b, True)
    assert jnp.allclose(loss3, ref3, rtol=1e-5, atol=1e-6), (loss3, ref3)

    # Lane (D) tiling guard path (budget below one 8-row x D tile -> TD = 128).
    loss4 = jax.block_until_ready(
        joints_huber_loss(out_b, tgt_b, w_b, use_target_weight=True,
                          tile_bytes=4 * 1024))
    assert jnp.allclose(loss4, ref3, rtol=1e-5, atol=1e-6), (loss4, ref3)

    print("KERNEL_OK")
</pallas_src>

<mosaic_0001>
module attributes {stable_mosaic.version = 11 : i64} {
  func.func @kernel(%arg0: i32, %arg1: i32, %arg2: i32, %arg3: memref<8x256xf32, #tpu.memory_space<vmem>>, %arg4: memref<8x256xf32, #tpu.memory_space<vmem>>, %arg5: memref<8x1xf32, #tpu.memory_space<vmem>>, %arg6: memref<8x256xf32, #tpu.memory_space<vmem>>) attributes {dimension_semantics = [#tpu.dimension_semantics<parallel>, #tpu.dimension_semantics<parallel>, #tpu.dimension_semantics<arbitrary>], iteration_bounds = array<i64: 1, 1, 1>, scalar_prefetch = 0 : i64, scratch_operands = 0 : i64, tpu.core_type = #tpu.core_type<tc>, window_params = [{transform_indices = @transform_0, window_bounds = array<i64: 8, 256>}, {transform_indices = @transform_1, window_bounds = array<i64: 8, 256>}, {transform_indices = @transform_2, window_bounds = array<i64: 8, 1>}, {transform_indices = @transform_3, window_bounds = array<i64: 8, 256>}]} {
    %c0_i32 = arith.constant 0 : i32
    %0 = arith.cmpi eq, %arg2, %c0_i32 : i32
    %1 = arith.extui %0 : i1 to i32
    %c0_i32_0 = arith.constant 0 : i32
    %2 = arith.cmpi ne, %1, %c0_i32_0 : i32
    scf.if %2 {
      %cst_13 = arith.constant 0.000000e+00 : f32
      %23 = vector.broadcast %cst_13 : f32 to vector<8x256xf32>
      %c0_14 = arith.constant 0 : index
      %c0_15 = arith.constant 0 : index
      %24 = vector.load %arg6[%c0_14, %c0_15] : memref<8x256xf32, #tpu.memory_space<vmem>>, vector<8x256xf32>
      tpu.vector_store %arg6[%c0_14, %c0_15], %23 {strides = array<i32>} : memref<8x256xf32, #tpu.memory_space<vmem>>, vector<8x256xf32>,
    } else {
    }
    %c0 = arith.constant 0 : index
    %c0_1 = arith.constant 0 : index
    %3 = vector.load %arg3[%c0, %c0_1] : memref<8x256xf32, #tpu.memory_space<vmem>>, vector<8x256xf32>
    %c0_2 = arith.constant 0 : index
    %c0_3 = arith.constant 0 : index
    %4 = vector.load %arg4[%c0_2, %c0_3] : memref<8x256xf32, #tpu.memory_space<vmem>>, vector<8x256xf32>
    %5 = arith.subf %3, %4 : vector<8x256xf32>
    %c0_4 = arith.constant 0 : index
    %c0_5 = arith.constant 0 : index
    %6 = vector.load %arg5[%c0_4, %c0_5] : memref<8x1xf32, #tpu.memory_space<vmem>>, vector<8x1xf32>
    %7 = vector.broadcast %6 : vector<8x1xf32> to vector<8x256xf32>
    %8 = arith.mulf %5, %7 : vector<8x256xf32>
    %9 = math.absf %8 : vector<8x256xf32>
    %cst = arith.constant 1.000000e+00 : f32
    %10 = vector.broadcast %cst : f32 to vector<8x256xf32>
    %11 = arith.cmpf olt, %9, %10 : vector<8x256xf32>
    %cst_6 = arith.constant 5.000000e-01 : f32
    %12 = vector.broadcast %cst_6 : f32 to vector<8x256xf32>
    %13 = arith.mulf %12, %8 : vector<8x256xf32>
    %14 = arith.mulf %13, %8 : vector<8x256xf32>
    %cst_7 = arith.constant 5.000000e-01 : f32
    %15 = vector.broadcast %cst_7 : f32 to vector<8x256xf32>
    %16 = arith.subf %9, %15 : vector<8x256xf32>
    %17 = arith.select %11, %14, %16 : vector<8x256xi1>, vector<8x256xf32>
    %c0_8 = arith.constant 0 : index
    %c0_9 = arith.constant 0 : index
    %18 = vector.load %arg6[%c0_8, %c0_9] : memref<8x256xf32, #tpu.memory_space<vmem>>, vector<8x256xf32>
    %19 = vector.shape_cast %17 : vector<8x256xf32> to vector<1x8x256xf32>
    %cst_10 = arith.constant dense<0.000000e+00> : vector<8x256xf32>
    %20 = vector.multi_reduction <add>, %19, %cst_10 [0] : vector<1x8x256xf32> to vector<8x256xf32>
    %21 = arith.addf %18, %20 : vector<8x256xf32>
    %c0_11 = arith.constant 0 : index
    %c0_12 = arith.constant 0 : index
    %22 = vector.load %arg6[%c0_11, %c0_12] : memref<8x256xf32, #tpu.memory_space<vmem>>, vector<8x256xf32>
    tpu.vector_store %arg6[%c0_11, %c0_12], %21 {strides = array<i32>} : memref<8x256xf32, #tpu.memory_space<vmem>>, vector<8x256xf32>,
    return
  }
  func.func @transform_0(%arg0: i32, %arg1: i32, %arg2: i32) -> (i32, i32) {
    %c1_i32 = arith.constant 1 : i32
    %0 = arith.muli %arg0, %c1_i32 : i32
    %1 = arith.addi %0, %arg2 : i32
    %c0_i32 = arith.constant 0 : i32
    return %1, %arg1 : i32, i32
  }
  func.func @transform_1(%arg0: i32, %arg1: i32, %arg2: i32) -> (i32, i32) {
    %c1_i32 = arith.constant 1 : i32
    %0 = arith.muli %arg0, %c1_i32 : i32
    %1 = arith.addi %0, %arg2 : i32
    %c0_i32 = arith.constant 0 : i32
    return %1, %arg1 : i32, i32
  }
  func.func @transform_2(%arg0: i32, %arg1: i32, %arg2: i32) -> (i32, i32) {
    %c1_i32 = arith.constant 1 : i32
    %0 = arith.muli %arg0, %c1_i32 : i32
    %1 = arith.addi %0, %arg2 : i32
    %c0_i32 = arith.constant 0 : i32
    %c0_i32_0 = arith.constant 0 : i32
    return %1, %c0_i32 : i32, i32
  }
  func.func @transform_3(%arg0: i32, %arg1: i32, %arg2: i32) -> (i32, i32) {
    %c0_i32 = arith.constant 0 : i32
    return %arg0, %arg1 : i32, i32
  }
}

</mosaic_0001>

<bundles_post_ra>
// kernel: tpu_custom_call.1
= control target key start
LH: loop header
LB: loop body
LE: loop exit
PB: predicated region body
PF: predicated region fallthrough
CT: control target
= control target key end

     0   :  { %8 = vsyncpa [#allocation3], 0  ;;  %s271_s0 = inlined_call_operand.hbm [shape: f32[8,256], index: 0, kind: input, shape index: {}]   ;;  %s272_s1 = inlined_call_operand.hbm [shape: f32[8,256], index: 1, kind: input, shape index: {}]   ;;  %s273_s2 = inlined_call_operand.vmem [shape: f32[8,1], index: 2, kind: input, shape index: {}]   ;;  %s274_s3 = inlined_call_operand.hbm [shape: f32[8,256], index: 3, kind: output, shape index: {}]  }
   0x1   :  { %9 = vsyncpa [#allocation6], 0 }
   0x2   :  { %10 = vsyncpa [#allocation4], 0  ;;  %s208_s12 = smov [#allocation2]   ;;  %s209_s14 = smov [#allocation5]  }
   0x3   :  { %s21_s13 = sshll.u32 %s208_s12, 4  ;;  %s35_s15 = sshll.u32 %s209_s14, 4  ;;  %s22_s13 = int_to_ptr.vmem [resolvable:$true] %s21_s13  ;;  %s36_s15 = int_to_ptr.vmem [resolvable:$true] %s35_s15 }
   0x4   :  { %s136_s18 = scalar_lea.hbm %s271_s0, 256 }
   0x5   :  { %p137_p0 = scmp.ne.s32.totalorder %s271_s0, %s136_s18  ;;  %p140_p1 = scmp.lt.u32.totalorder %s136_s18, %s271_s0 }
   0x7   :  { %p142_p2 = pnand %p140_p1, %p137_p0 }
   0x9   :  { %145 = shalt.err (!%p142_p2)
}
   0xa   :  { %s146_s23 = scalar_lea.vmem %s22_s13, 256  ;;  %p151_p4 = scmp.lt.s32.totalorder %s22_s13, %s22_s13 }
   0xb   :  { %p147_p3 = scmp.ne.s32.totalorder %s22_s13, %s146_s23  ;;  %p152_p5 = scmp.lt.s32.totalorder %s146_s23, %s146_s23 }
   0xd   :  { %p153_p6 = por %p152_p5, %p151_p4 }
   0xf   :  { %p154_p7 = pnand %p153_p6, %p147_p3 }
  0x11   :  { %157 = shalt.err (!%p154_p7)
}
  0x12   :  { %24 = dma.hbm_to_vmem [thread:$0]  %s271_s0, 256, %s22_s13, [#allocation3]  }
  0x13   :  { %s158_s28 = scalar_lea.hbm %s272_s1, 256 }
  0x14   :  { %p159_p8 = scmp.ne.s32.totalorder %s272_s1, %s158_s28  ;;  %p162_p9 = scmp.lt.u32.totalorder %s158_s28, %s272_s1 }
  0x16   :  { %p164_p10 = pnand %p162_p9, %p159_p8 }
  0x18   :  { %167 = shalt.err (!%p164_p10)
}
  0x19   :  { %s168_s6 = scalar_lea.vmem %s36_s15, 256  ;;  %p173_p12 = scmp.lt.s32.totalorder %s36_s15, %s36_s15 }
  0x1a   :  { %p169_p11 = scmp.ne.s32.totalorder %s36_s15, %s168_s6  ;;  %p174_p13 = scmp.lt.s32.totalorder %s168_s6, %s168_s6 }
  0x1c   :  { %p175_p0 = por %p174_p13, %p173_p12 }
  0x1e   :  { %p176_p1 = pnand %p175_p0, %p169_p11 }
  0x20   :  { %179 = shalt.err (!%p176_p1)
}
  0x21   :  { %38 = dma.hbm_to_vmem [thread:$0]  %s272_s1, 256, %s36_s15, [#allocation6]  }
  0x22   :  { %202 = dma.done.wait [#allocation3], 256  }
  0x23   :  { %203 = vsyncadd [#allocation3], 4294967040 }
  0x24   :  { %204 = dma.done.wait [#allocation6], 256  }
  0x25   :  { %205 = vsyncadd [#allocation6], 4294967040  ;;  %v210_v0 = vmov 0   ;;  %v78_v1 = vld [vmem:[%s273_s2] sm:$0xff]  ;;  %v73_v3 = vld [vmem:[#allocation2 + $0x8] sm:$0xff]  ;;  %s211_s1 = smov [#allocation7]  }
  0x26   :  { %135 = vset.pattern.permute.xlu0 %v210_v0  ;;  %v72_v2 = vld [vmem:[#allocation2] sm:$0xff]  ;;  %v74_v4 = vld [vmem:[#allocation5] sm:$0xff]  ;;  %v75_v5 = vld [vmem:[#allocation5 + $0x8] sm:$0xff]  ;;  %s112_s2 = sshll.u32 %s211_s1, 4  ;;  %s113_s2 = int_to_ptr.vmem [resolvable:$true] %s112_s2 }
  0x27   :  { %81 = vperm.xlu0 %135, %v78_v1   ;;  %v76_v6 = vsub.f32 %v72_v2, %v74_v4  ;;  %v77_v7 = vsub.f32 %v73_v3, %v75_v5  ;;  %s180_s10 = scalar_lea.vmem %s113_s2, 256  ;;  %p185_p3 = scmp.lt.s32.totalorder %s113_s2, %s113_s2 }
  0x28   :  { %p181_p2 = scmp.ne.s32.totalorder %s113_s2, %s180_s10  ;;  %p186_p4 = scmp.lt.s32.totalorder %s180_s10, %s180_s10 }
  0x2a   :  { %p187_p5 = por %p186_p4, %p185_p3 }
  0x2c   :  { %p188_p6 = pnand %p187_p5, %p181_p2 }
  0xa6   :  { %v82_v8 = vpop.permute.xlu0 %81 }
  0xa7   :  { %v84_v9 = vmul.f32 %v82_v8, %v76_v6  ;;  %v85_v10 = vmul.f32 %v82_v8, %v77_v7 }
  0xa9   :  { %v86_v11 = vand.u32 2147483647, %v84_v9  ;;  %v87_v12 = vand.u32 2147483647, %v85_v10  ;;  %v90_v13 = vmul.f32 0.5, %v84_v9  ;;  %v91_v14 = vmul.f32 0.5, %v85_v10 }
  0xab   :  { %vm88_vm0 = vcmp.lt.f32.partialorder %v86_v11, 1.0  ;;  %vm89_vm1 = vcmp.lt.f32.partialorder %v87_v12, 1.0  ;;  %v92_v15 = vmul.f32 %v90_v13, %v84_v9  ;;  %v93_v16 = vmul.f32 %v91_v14, %v85_v10 }
  0xac   :  { %v128_v17 = vadd.f32 -0.5, %v86_v11  ;;  %v129_v18 = vadd.f32 -0.5, %v87_v12 }
  0xae   :  { %v96_v19 = vsel %vm88_vm0, %v92_v15, %v128_v17  ;;  %v97_v20 = vsel %vm89_vm1, %v93_v16, %v129_v18 }
  0xaf   :  { %104 = vst [vmem:[#allocation7] sm:$0xff] %v96_v19  ;;  %105 = vst [vmem:[#allocation7 + $0x8] sm:$0xff] %v97_v20 }
  0xb0   :  { %191 = shalt.err (!%p188_p6)
}
  0xb1   :  { %s192_s13 = scalar_lea.hbm %s274_s3, 256 }
  0xb2   :  { %p193_p7 = scmp.ne.s32.totalorder %s274_s3, %s192_s13  ;;  %p196_p8 = scmp.lt.u32.totalorder %s192_s13, %s274_s3 }
  0xb4   :  { %p198_p9 = pnand %p196_p8, %p193_p7 }
  0xb6   :  { %201 = shalt.err (!%p198_p9)
}
  0xb7   :  { %115 = dma.vmem_to_hbm [thread:$0]  %s113_s2, 256, %s274_s3, [#allocation4]  }
  0xb8   :  { %206 = dma.done.wait [#allocation4], 256  }
  0xb9   :  { %207 = vsyncadd [#allocation4], 4294967040 }
  0xba   :  { %119 = vsyncpa [#allocation3], 1 }
  0xbb   :  { %120 = vsyncpa [#allocation6], 1 }
  0xbc   :  { %121 = vsyncpa [#allocation4], 1 }

</bundles_post_ra>
